<compile_context>
chip_gen: v7x
topology: tpu7x:2x2x1
jax: 0.10.0
libtpu: 0.0.40
codegen_flags: <defaults>
</compile_context>

<pallas_src>
import jax
import jax.numpy as jnp
from jax.experimental import pallas as pl
from jax.experimental.pallas import tpu as pltpu


def _round_up(x, m):
    return ((x + m - 1) // m) * m


def _pad2(a, rows, cols):
    r, c = a.shape
    if r == rows and c == cols:
        return a
    return jnp.pad(a, ((0, rows - r), (0, cols - c)))


def _vmem_budget_bytes():
    """Physical VMEM capacity minus headroom for compiler internal scratch."""
    try:
        cap = int(pltpu.get_tpu_info().vmem_capacity_bytes)
    except Exception:
        cap = 64 * 1024 * 1024  # conservative fallback (v7x-sized)
    headroom = max(12 * 1024 * 1024, cap // 8)   # 16 MiB @128 MiB, 12 MiB @64 MiB
    return max(cap - headroom, 24 * 1024 * 1024)


def _vmem_estimate(tile_m, tile_n, in_dim_p, hidden_p, out_bytes):
    """Resident bytes for one grid step (double-buffered blocks + scratch)."""
    return (2 * tile_m * in_dim_p * 2          # x blocks (bf16)
            + 2 * in_dim_p * hidden_p * 2      # W_enc blocks (bf16)
            + 2 * hidden_p * 4                 # b_enc blocks (f32)
            + 2 * hidden_p * tile_n * 2        # W_proj blocks (bf16)
            + 2 * tile_n * 4                   # b_proj blocks (f32)
            + 2 * tile_m * tile_n * out_bytes  # out blocks
            + tile_m * hidden_p * 2)           # h scratch (bf16)


# ---------------------------------------------------------------------------
# Fused kernel: encoder Linear (cached across proj tiles) + projection Linear
# ---------------------------------------------------------------------------
def _fused_encode_project_kernel(rows_ref, x_ref, we_ref, be_ref, wp_ref,
                                 bp_ref, out_ref, h_ref):
    e = pl.program_id(0)
    i = pl.program_id(1)
    j = pl.program_id(2)
    tile_m = h_ref.shape[0]
    # Skip tiles that contain only padded rows for this encoder: short
    # modalities (fewer tokens than rows_max) burn no MXU work on garbage.
    has_valid_rows = i * tile_m < rows_ref[e]

    # Encoder matmul only on the first proj-tile step; the bf16 intermediate
    # lives in VMEM scratch and is reused for every j of this (e, i) tile.
    @pl.when(jnp.logical_and(has_valid_rows, j == 0))
    def _():
        h = jnp.dot(x_ref[0], we_ref[0], preferred_element_type=jnp.float32)
        h_ref[...] = (h + be_ref[0]).astype(h_ref.dtype)

    @pl.when(has_valid_rows)
    def _():
        y = jnp.dot(h_ref[...], wp_ref[...], preferred_element_type=jnp.float32)
        out_ref[0] = (y + bp_ref[...]).astype(out_ref.dtype)


def fused_encode_project(rows, x_stack, we_stack, be_stack, w_proj, b_proj,
                         *, tile_m, tile_n, out_dtype, vmem_limit_bytes):
    """rows:[E] int32, x_stack:[E,rows_p,in_dim_p] bf16 -> [E,rows_p,proj_p]."""
    num_enc, rows_p, in_dim_p = x_stack.shape
    hidden_p = we_stack.shape[2]
    proj_p = w_proj.shape[1]
    assert rows_p % tile_m == 0 and proj_p % tile_n == 0

    grid = (num_enc, rows_p // tile_m, proj_p // tile_n)

    return pl.pallas_call(
        _fused_encode_project_kernel,
        out_shape=jax.ShapeDtypeStruct((num_enc, rows_p, proj_p), out_dtype),
        grid_spec=pltpu.PrefetchScalarGridSpec(
            num_scalar_prefetch=1,   # per-encoder valid-row counts (SMEM)
            grid=grid,
            in_specs=[
                pl.BlockSpec((1, tile_m, in_dim_p),
                             lambda e, i, j, rows: (e, i, 0)),
                pl.BlockSpec((1, in_dim_p, hidden_p),
                             lambda e, i, j, rows: (e, 0, 0)),
                pl.BlockSpec((1, 1, hidden_p),
                             lambda e, i, j, rows: (e, 0, 0)),
                pl.BlockSpec((hidden_p, tile_n),
                             lambda e, i, j, rows: (0, j)),
                pl.BlockSpec((1, tile_n),
                             lambda e, i, j, rows: (0, j)),
            ],
            out_specs=pl.BlockSpec((1, tile_m, tile_n),
                                   lambda e, i, j, rows: (e, i, j)),
            scratch_shapes=[pltpu.VMEM((tile_m, hidden_p), jnp.bfloat16)],
        ),
        compiler_params=pltpu.CompilerParams(
            dimension_semantics=("parallel", "parallel", "arbitrary"),
            vmem_limit_bytes=int(vmem_limit_bytes)),
    )(rows, x_stack, we_stack, be_stack, w_proj, b_proj)


# ---------------------------------------------------------------------------
# JAX-side ModalitySubmodules equivalent
# ---------------------------------------------------------------------------
class ModalitySubmodulesPallas:
    """Dict of Linear encoders + one shared input-projection Linear.

    forward() == encode -> combine (seq concat) -> project.  The projection is
    fused into the encoder kernel (Linear is tokenwise, so it distributes over
    the seq-concat done by combine_embeddings).  Decoders / output_projections
    are held but unused by forward(), mirroring the abstract base whose forward
    path only encodes + input-projects.
    """

    def __init__(self, encoders, input_projections, decoders=None,
                 output_projections=None, *, tile_m=None, tile_n=None,
                 out_dtype=jnp.bfloat16):
        self.encoders = dict(encoders)                      # {name: (W, b)}
        self.input_projections = list(input_projections)    # [(W, b)]
        self.decoders = dict(decoders or {})
        self.output_projections = list(output_projections or [])
        self.out_dtype = out_dtype

        self._names = list(self.encoders.keys())
        assert self._names and self.input_projections, \
            "fused path needs >=1 encoder and an input projection"
        w0 = self.encoders[self._names[0]][0]
        in_dim, hidden = w0.shape
        for n in self._names:
            if tuple(self.encoders[n][0].shape) != (in_dim, hidden):
                # TODO(synk): add a per-encoder (non-stacked) fallback kernel
                # for heterogeneous encoder shapes allowed by the base class.
                raise ValueError(
                    "fused path requires all encoders to share (in_dim, hidden)")
        w_proj, b_proj = self.input_projections[0]
        assert w_proj.shape[0] == hidden
        proj_dim = w_proj.shape[1]

        self.in_dim, self.hidden, self.proj_dim = in_dim, hidden, proj_dim
        self.in_dim_p = _round_up(in_dim, 128)
        self.hidden_p = _round_up(hidden, 128)

        # --- generation-aware tile selection under the VMEM budget ---------
        budget = _vmem_budget_bytes()
        out_bytes = jnp.dtype(out_dtype).itemsize
        if tile_m is not None:
            tm_pref = max(16, (int(tile_m) // 16) * 16)
        else:
            # 128 MiB parts (v5e/v6e): 512.  64 MiB parts (v7x): 256.
            tm_pref = 512 if budget >= 96 * 1024 * 1024 else 256
        full_n = _round_up(proj_dim, 128)

        sel_tm = sel_tn = None
        tm_cands = sorted({t for t in (tm_pref, 512, 256, 128, 64, 32, 16)
                           if t <= tm_pref}, reverse=True)
        for tm in tm_cands:
            if tile_n is not None:
                tn_cands = [min(_round_up(int(tile_n), 128), full_n)]
            else:
                # prefer full W_proj residency (j collapses), then shrink
                # tile_n before tile_m
                tn_cands = [full_n] + [n for n in (4096, 2048, 1024, 512, 256,
                                                   128) if n < full_n]
            for tn in tn_cands:
                if _vmem_estimate(tm, tn, self.in_dim_p, self.hidden_p,
                                  out_bytes) <= budget:
                    sel_tm, sel_tn = tm, tn
                    break
            if sel_tm is not None:
                break
        if sel_tm is None:
            # TODO(synk): K-tile W_enc when in_dim_p*hidden_p alone exceeds the
            # VMEM budget (very large encoder weights on v7x).
            sel_tm, sel_tn = 16, 128
        self.tile_m, self.tile_n = sel_tm, sel_tn
        self.proj_p = _round_up(proj_dim, self.tile_n)
        self.vmem_limit_bytes = budget

        # --- one-time weight prep (pad + bf16 + stack), cached --------------
        self._we_stack = jnp.stack(
            [_pad2(jnp.asarray(self.encoders[n][0]),
                   self.in_dim_p, self.hidden_p).astype(jnp.bfloat16)
             for n in self._names])
        self._be_stack = jnp.stack(
            [_pad2(jnp.asarray(self.encoders[n][1], jnp.float32).reshape(1, -1),
                   1, self.hidden_p)
             for n in self._names])
        self._wp = _pad2(jnp.asarray(w_proj),
                         self.hidden_p, self.proj_p).astype(jnp.bfloat16)
        self._bp = _pad2(jnp.asarray(b_proj, jnp.float32).reshape(1, -1),
                         1, self.proj_p)

    # --- abstract-method equivalents ---------------------------------------
    def encode(self, data_batch):
        names = [n for n in self._names if n in data_batch]
        if not names:
            return []
        if len(names) == len(self._names):
            we_stack, be_stack = self._we_stack, self._be_stack
        else:
            sel = jnp.asarray([self._names.index(n) for n in names], jnp.int32)
            we_stack, be_stack = self._we_stack[sel], self._be_stack[sel]

        shapes, xs = [], []
        for n in names:
            x = data_batch[n]
            b, s, d = x.shape
            assert d == self.in_dim, "fused path requires the shared in_dim"
            shapes.append((b, s))
            xs.append(x.reshape(b * s, d))

        rows = [b * s for b, s in shapes]
        rows_max = max(rows)
        tile_m = min(self.tile_m, _round_up(rows_max, 16))
        rows_p = _round_up(rows_max, tile_m)

        x_stack = jnp.stack(
            [_pad2(x, rows_p, self.in_dim_p).astype(jnp.bfloat16) for x in xs])
        rows_arr = jnp.asarray(rows, jnp.int32)

        y = fused_encode_project(
            rows_arr, x_stack, we_stack, be_stack, self._wp, self._bp,
            tile_m=tile_m, tile_n=self.tile_n, out_dtype=self.out_dtype,
            vmem_limit_bytes=self.vmem_limit_bytes)

        out = []
        for k, (b, s) in enumerate(shapes):
            out.append(y[k, :b * s, :self.proj_dim].reshape(b, s, self.proj_dim))
        return out

    def combine_embeddings(self, embeddings):
        # concat along the sequence/token axis
        return jnp.concatenate(embeddings, axis=1)

    def project_embeddings(self, embeddings, is_input=True):
        # input projection is already fused into the Pallas kernel
        if not embeddings:
            return None
        return embeddings[0]

    def decode(self, embeddings, data_batch):
        # TODO(synk): abstract base defines no decoder computation; identity.
        return embeddings

    def forward(self, encoder_inputs):
        embeddings = self.encode(encoder_inputs)
        if not embeddings:
            return None
        combined = self.combine_embeddings(embeddings)
        return self.project_embeddings([combined], is_input=True)


# ---------------------------------------------------------------------------
# Demo / correctness check
# ---------------------------------------------------------------------------
if __name__ == "__main__":
    key = jax.random.PRNGKey(0)
    batch, seq, in_dim, hidden, proj_dim = 2, 8, 32, 32, 32

    keys = jax.random.split(key, 8)
    w_enc_a = jax.random.normal(keys[0], (in_dim, hidden), jnp.float32) * 0.05
    b_enc_a = jax.random.normal(keys[1], (1, hidden), jnp.float32) * 0.01
    w_enc_b = jax.random.normal(keys[2], (in_dim, hidden), jnp.float32) * 0.05
    b_enc_b = jax.random.normal(keys[3], (1, hidden), jnp.float32) * 0.01
    w_proj = jax.random.normal(keys[4], (hidden, proj_dim), jnp.float32) * 0.05
    b_proj = jax.random.normal(keys[5], (1, proj_dim), jnp.float32) * 0.01

    module = ModalitySubmodulesPallas(
        encoders={"images": (w_enc_a, b_enc_a), "audio": (w_enc_b, b_enc_b)},
        input_projections=[(w_proj, b_proj)],
    )

    x_images = jax.random.normal(keys[6], (batch, seq, in_dim), jnp.float32)
    x_audio = jax.random.normal(keys[7], (batch, seq, in_dim), jnp.float32)
    encoder_inputs = {"images": x_images, "audio": x_audio}

    out = module.forward(encoder_inputs)
    out = jax.block_until_ready(out)

    # pure-JAX reference matching the kernel's precision choices
    # (bf16 operands, f32 accumulation, bf16 hidden, bf16 output)
    def ref_stream(x, we, be):
        xb = x.reshape(-1, in_dim).astype(jnp.bfloat16)
        h = jnp.dot(xb, we.astype(jnp.bfloat16),
                    preferred_element_type=jnp.float32) + be
        y = jnp.dot(h.astype(jnp.bfloat16), w_proj.astype(jnp.bfloat16),
                    preferred_element_type=jnp.float32) + b_proj
        return y.astype(module.out_dtype).reshape(batch, seq, proj_dim)

    ref = jnp.concatenate(
        [ref_stream(x_images, w_enc_a, b_enc_a),
         ref_stream(x_audio, w_enc_b, b_enc_b)], axis=1)

    assert out.shape == (batch, 2 * seq, proj_dim), out.shape
    diff = jnp.max(jnp.abs(out.astype(jnp.float32) - ref.astype(jnp.float32)))
    assert jnp.allclose(out.astype(jnp.float32), ref.astype(jnp.float32),
                        atol=2e-2, rtol=2e-2), float(diff)

    print("KERNEL_OK")
</pallas_src>

<mosaic_0001>
module attributes {stable_mosaic.version = 11 : i64} {
  func.func @_fused_encode_project_kernel(%arg0: i32, %arg1: i32, %arg2: i32, %arg3: memref<2xi32, #tpu.memory_space<smem>>, %arg4: memref<1x16x128xbf16, #tpu.memory_space<vmem>>, %arg5: memref<1x128x128xbf16, #tpu.memory_space<vmem>>, %arg6: memref<1x1x128xf32, #tpu.memory_space<vmem>>, %arg7: memref<128x128xbf16, #tpu.memory_space<vmem>>, %arg8: memref<1x128xf32, #tpu.memory_space<vmem>>, %arg9: memref<1x16x128xbf16, #tpu.memory_space<vmem>>, %arg10: memref<16x128xbf16, #tpu.memory_space<vmem>>) attributes {dimension_semantics = [#tpu.dimension_semantics<parallel>, #tpu.dimension_semantics<parallel>, #tpu.dimension_semantics<arbitrary>], iteration_bounds = array<i64: 2, 1, 1>, scalar_prefetch = 1 : i64, scratch_operands = 1 : i64, tpu.core_type = #tpu.core_type<tc>, window_params = [{transform_indices = @transform_0, window_bounds = array<i64: 1, 16, 128>}, {transform_indices = @transform_1, window_bounds = array<i64: 1, 128, 128>}, {transform_indices = @transform_2, window_bounds = array<i64: 1, 1, 128>}, {transform_indices = @transform_3, window_bounds = array<i64: 128, 128>}, {transform_indices = @transform_4, window_bounds = array<i64: 1, 128>}, {transform_indices = @transform_5, window_bounds = array<i64: 1, 16, 128>}]} {
    %c16_i32 = arith.constant 16 : i32
    %0 = arith.muli %arg1, %c16_i32 : i32
    %1 = arith.index_cast %arg0 : i32 to index
    %2 = memref.load %arg3[%1] : memref<2xi32, #tpu.memory_space<smem>>
    %3 = arith.cmpi slt, %0, %2 : i32
    %c0_i32 = arith.constant 0 : i32
    %4 = arith.cmpi eq, %arg2, %c0_i32 : i32
    %5 = arith.andi %3, %4 : i1
    %6 = arith.extui %5 : i1 to i32
    %c0_i32_0 = arith.constant 0 : i32
    %7 = arith.cmpi ne, %6, %c0_i32_0 : i32
    scf.if %7 {
      %c0 = arith.constant 0 : index
      %c0_2 = arith.constant 0 : index
      %c0_3 = arith.constant 0 : index
      %10 = vector.load %arg4[%c0, %c0_2, %c0_3] : memref<1x16x128xbf16, #tpu.memory_space<vmem>>, vector<1x16x128xbf16>
      %11 = vector.shape_cast %10 : vector<1x16x128xbf16> to vector<16x128xbf16>
      %c0_4 = arith.constant 0 : index
      %c0_5 = arith.constant 0 : index
      %c0_6 = arith.constant 0 : index
      %12 = vector.load %arg5[%c0_4, %c0_5, %c0_6] : memref<1x128x128xbf16, #tpu.memory_space<vmem>>, vector<1x128x128xbf16>
      %13 = vector.shape_cast %12 : vector<1x128x128xbf16> to vector<128x128xbf16>
      %cst = arith.constant dense<0.000000e+00> : vector<16x128xf32>
      %14 = tpu.matmul %11, %13, %cst {dimension_numbers = #tpu.dot_dimension_numbers<[1], [0], [0], [1], [0, 0, 1, 1], [], []>} : vector<16x128xbf16>, vector<128x128xbf16>, vector<16x128xf32> -> vector<16x128xf32>
      %c0_7 = arith.constant 0 : index
      %c0_8 = arith.constant 0 : index
      %c0_9 = arith.constant 0 : index
      %15 = vector.load %arg6[%c0_7, %c0_8, %c0_9] : memref<1x1x128xf32, #tpu.memory_space<vmem>>, vector<1x1x128xf32>
      %16 = vector.shape_cast %15 : vector<1x1x128xf32> to vector<1x128xf32>
      %17 = vector.broadcast %16 : vector<1x128xf32> to vector<16x128xf32>
      %18 = arith.addf %14, %17 : vector<16x128xf32>
      %19 = arith.truncf %18 : vector<16x128xf32> to vector<16x128xbf16>
      %c0_10 = arith.constant 0 : index
      %c0_11 = arith.constant 0 : index
      %20 = vector.load %arg10[%c0_10, %c0_11] : memref<16x128xbf16, #tpu.memory_space<vmem>>, vector<16x128xbf16>
      tpu.vector_store %arg10[%c0_10, %c0_11], %19 {strides = array<i32>} : memref<16x128xbf16, #tpu.memory_space<vmem>>, vector<16x128xbf16>,
    } else {
    }
    %8 = arith.extui %3 : i1 to i32
    %c0_i32_1 = arith.constant 0 : i32
    %9 = arith.cmpi ne, %8, %c0_i32_1 : i32
    scf.if %9 {
      %c0 = arith.constant 0 : index
      %c0_2 = arith.constant 0 : index
      %10 = vector.load %arg10[%c0, %c0_2] : memref<16x128xbf16, #tpu.memory_space<vmem>>, vector<16x128xbf16>
      %c0_3 = arith.constant 0 : index
      %c0_4 = arith.constant 0 : index
      %11 = vector.load %arg7[%c0_3, %c0_4] : memref<128x128xbf16, #tpu.memory_space<vmem>>, vector<128x128xbf16>
      %cst = arith.constant dense<0.000000e+00> : vector<16x128xf32>
      %12 = tpu.matmul %10, %11, %cst {dimension_numbers = #tpu.dot_dimension_numbers<[1], [0], [0], [1], [0, 0, 1, 1], [], []>} : vector<16x128xbf16>, vector<128x128xbf16>, vector<16x128xf32> -> vector<16x128xf32>
      %c0_5 = arith.constant 0 : index
      %c0_6 = arith.constant 0 : index
      %13 = vector.load %arg8[%c0_5, %c0_6] : memref<1x128xf32, #tpu.memory_space<vmem>>, vector<1x128xf32>
      %14 = vector.broadcast %13 : vector<1x128xf32> to vector<16x128xf32>
      %15 = arith.addf %12, %14 : vector<16x128xf32>
      %16 = arith.truncf %15 : vector<16x128xf32> to vector<16x128xbf16>
      %c0_7 = arith.constant 0 : index
      %c0_8 = arith.constant 0 : index
      %c0_9 = arith.constant 0 : index
      %17 = vector.load %arg9[%c0_7, %c0_8, %c0_9] : memref<1x16x128xbf16, #tpu.memory_space<vmem>>, vector<1x16x128xbf16>
      %18 = vector.shape_cast %17 : vector<1x16x128xbf16> to vector<16x128xbf16>
      %19 = vector.shape_cast %16 : vector<16x128xbf16> to vector<1x16x128xbf16>
      tpu.vector_store %arg9[%c0_7, %c0_8, %c0_9], %19 {strides = array<i32>} : memref<1x16x128xbf16, #tpu.memory_space<vmem>>, vector<1x16x128xbf16>,
    } else {
    }
    return
  }
  func.func @transform_0(%arg0: i32, %arg1: i32, %arg2: i32, %arg3: memref<2xi32, #tpu.memory_space<smem>>) -> (i32, i32, i32) {
    %c0_i32 = arith.constant 0 : i32
    %c0_i32_0 = arith.constant 0 : i32
    return %arg0, %arg1, %c0_i32 : i32, i32, i32
  }
  func.func @transform_1(%arg0: i32, %arg1: i32, %arg2: i32, %arg3: memref<2xi32, #tpu.memory_space<smem>>) -> (i32, i32, i32) {
    %c0_i32 = arith.constant 0 : i32
    %c0_i32_0 = arith.constant 0 : i32
    %c0_i32_1 = arith.constant 0 : i32
    return %arg0, %c0_i32, %c0_i32_0 : i32, i32, i32
  }
  func.func @transform_2(%arg0: i32, %arg1: i32, %arg2: i32, %arg3: memref<2xi32, #tpu.memory_space<smem>>) -> (i32, i32, i32) {
    %c0_i32 = arith.constant 0 : i32
    %c0_i32_0 = arith.constant 0 : i32
    %c0_i32_1 = arith.constant 0 : i32
    return %arg0, %c0_i32, %c0_i32_0 : i32, i32, i32
  }
  func.func @transform_3(%arg0: i32, %arg1: i32, %arg2: i32, %arg3: memref<2xi32, #tpu.memory_space<smem>>) -> (i32, i32) {
    %c0_i32 = arith.constant 0 : i32
    %c0_i32_0 = arith.constant 0 : i32
    return %c0_i32, %arg2 : i32, i32
  }
  func.func @transform_4(%arg0: i32, %arg1: i32, %arg2: i32, %arg3: memref<2xi32, #tpu.memory_space<smem>>) -> (i32, i32) {
    %c0_i32 = arith.constant 0 : i32
    %c0_i32_0 = arith.constant 0 : i32
    return %c0_i32, %arg2 : i32, i32
  }
  func.func @transform_5(%arg0: i32, %arg1: i32, %arg2: i32, %arg3: memref<2xi32, #tpu.memory_space<smem>>) -> (i32, i32, i32) {
    %c0_i32 = arith.constant 0 : i32
    return %arg0, %arg1, %arg2 : i32, i32, i32
  }
}

</mosaic_0001>

<bundles_post_ra>
// kernel: tpu_custom_call.1
= control target key start
LH: loop header
LB: loop body
LE: loop exit
PB: predicated region body
PF: predicated region fallthrough
CT: control target
= control target key end

     0   :  { %s1568_s0 = inlined_call_operand.hbm [shape: s32[2], index: 0, kind: input, shape index: {}]   ;;  %s1569_s1 = inlined_call_operand.hbm [shape: bf16[2,16,128], index: 1, kind: input, shape index: {}]   ;;  %s1570_s2 = inlined_call_operand.hbm [shape: bf16[2,128,128], index: 2, kind: input, shape index: {}]   ;;  %s1571_s3 = inlined_call_operand.vmem [shape: f32[2,1,128], index: 3, kind: input, shape index: {}]   ;;  %s1572_s4 = inlined_call_operand.hbm [shape: bf16[128,128], index: 4, kind: input, shape index: {}]   ;;  %s1573_s5 = inlined_call_operand.vmem [shape: f32[1,128], index: 5, kind: input, shape index: {}]   ;;  %s1574_s6 = inlined_call_operand.hbm [shape: bf16[2,16,128], index: 6, kind: output, shape index: {}]  }
   0x1   :  { %1584 = sst [smem:[#allocation20_spill]] %s1569_s1  ;;  %s1005_s23 = scalar_lea.hbm %s1568_s0, 16 }
   0x2   :  { %1585 = sst [smem:[#allocation21_spill]] %s1572_s4  ;;  %p1006_p0 = scmp.ne.s32.totalorder %s1568_s0, %s1005_s23 }
   0x3   :  { %p1009_p1 = scmp.lt.u32.totalorder %s1005_s23, %s1568_s0 }
   0x5   :  { %p1011_p2 = pnand %p1009_p1, %p1006_p0 }
   0x7   :  { %1014 = shalt.err (!%p1011_p2)  }
   0x8   :  { %s1197_s28 = smov [#allocation4]  }
   0x9   :  { %12 = dma.hbm_to_smem %s1568_s0, 16, %s1197_s28, [#allocation3] }
   0xa   :  { %1155 = dma.done.wait [#allocation3], 16 }
   0xb   :  { %1156 = vsyncadd [#allocation3], 4294967280 }
   0xc   :  { %14 = sfence }
   0xd   :  { %15 = vsyncpa [#allocation6], 0 }
   0xe   :  { %17 = vsyncpa [#allocation6 + $0x1], 0 }
   0xf   :  { %18 = vsyncpa [#allocation9], 0 }
  0x10   :  { %20 = vsyncpa [#allocation9 + $0x1], 0 }
  0x11   :  { %21 = vsyncpa [#allocation7], 0 }
  0x12   :  { %23 = vsyncpa [#allocation7 + $0x1], 0  ;;  %s1257_s7 = smov 0   ;;  %s1259_s8 = smov 0  }
  0x13   :  { %s1261_s9 = smov 0   ;;  %s1263_s10 = smov 0  }
  0x14   :  { %s1265_s11 = smov 0   ;;  %s1267_s0 = smov 0  }
  0x15 LB: > { %1586 = sst [smem:[#allocation17_spill]] %s1183_s9  ;;  %s1288_s12 = sadd.s32 4294967295, %s1195_s0   ;;  %s1195_s0 = sphi %s1267_s0, %s29_s0   ;;  %s1191_s11 = sphi %s1265_s11, %s1614_s11   ;;  %s1187_s10 = sphi %s1263_s10, %s1613_s10   ;;  %s1183_s9 = sphi %s1261_s9, %s1609_s9   ;;  %s1179_s8 = sphi %s1259_s8, %s1612_s8   ;;  %s1175_s7 = sphi %s1257_s7, %s1611_s7  }
  0x16   : > { %s787_s13 = sadd.s32 4294967294, %s1195_s0   ;;  %p70_p3 = scmp.ne.s32.totalorder %s1179_s8, %s1175_s7 }
  0x17   : > { %p1575_p4 = scmp.eq.s32.totalorder %s1288_s12, 0  ;;  %p208_p6 = scmp.eq.s32.totalorder %s787_s13, 1 }
  0x18   : > { %p788_p8 = scmp.ge.s32.totalorder %s1195_s0, 1  ;;  %p215_p10 = scmp.lt.s32.totalorder %s1195_s0, 3 }
  0x19   : > { %p1297_p7 = por %p1575_p4, %p70_p3  ;;  %p1302_p9 = por %p208_p6, %p70_p3 }
  0x1a   : > { %p1307_p11 = pnand %p788_p8, %p215_p10  ;;  %s1198_s17 = smov [#allocation10]  }
  0x1b   : > { %s1587_s14 = scalar_select %p1297_p7, 1, 0 }
  0x1c   : > { %s1588_s15 = scalar_select %p1302_p9, 1, 0 }
  0x1d   : > { %s1589_s16 = scalar_select %p1307_p11, 1, 0 }
  0x1e   : > { %s229_s18 = sshll.u32 %s1198_s17, 4  ;;  %p911_p12 = pneg %p1307_p11  ;;  %s230_s18 = int_to_ptr.vmem [resolvable:$true] %s229_s18 }
  0x1f   : > { %s48_s20 = sadd.s32 1, %s1191_s11  ;;  %s1591_s4 = sld [smem:[#allocation21_spill]] }
  0x20   : > { %p1316_p0 = pnand %p911_p12, %p1575_p4 }
  0x22   : > { %p1017_p2 = pneg %p1316_p0 }
  0x25   : > { %s1015_s23 = scalar_lea.hbm %s1591_s4, 1024 }
  0x26   : > { %p1016_p1 = scmp.ne.s32.totalorder %s1591_s4, %s1015_s23  ;;  %p1022_p8 = scmp.lt.u32.totalorder %s1015_s23, %s1591_s4 }
  0x28   : > { %p1018_p3 = pnand %p1017_p2, %p1016_p1 }
  0x2a   : > { %p1019_p6 = pneg %p1018_p3 }
  0x2c   : > { %p1024_p10 = pnand %p1022_p8, %p1019_p6 }
  0x2e   : > { %1027 = shalt.err (!%p1024_p10)
}
  0x2f   : > { %s1028_s28 = scalar_lea.vmem %s230_s18, 1024  ;;  %p1036_p5 = scmp.lt.s32.totalorder %s230_s18, %s230_s18 }
  0x30   : > { %p1029_p12 = scmp.ne.s32.totalorder %s230_s18, %s1028_s28  ;;  %p1037_p9 = scmp.lt.s32.totalorder %s1028_s28, %s1028_s28 }
  0x32   : > { %p1031_p13 = pnand %p1029_p12, %p1017_p2  ;;  %p1038_p7 = por %p1037_p9, %p1036_p5 }
  0x34   : > { %p1032_p4 = pneg %p1031_p13 }
  0x36   : > { %p1039_p11 = pnand %p1038_p7, %p1032_p4 }
  0x38   : > { %1042 = shalt.err (!%p1039_p11)
}
  0x39   : > { %s1578_s29 = smov 64   ;;  %s1580_s30 = smov 4  }
  0x3a   : > { %914 = dma.hbm_to_vmem [thread:$0]  (!%p1316_p0), %s1591_s4, 1024, %s230_s18, [#allocation9], %s1578_s29, %s1578_s29, %s1580_s30  }
  0x3b   : > { %p50_p4 = scmp.ge.s32.totalorder %s48_s20, 2  ;;  %s57_s21 = sadd.s32 1, %s1183_s9 }
  0x3c   : > { %p64_p5 = scmp.ne.s32.totalorder %s1183_s9, %s1179_s8  ;;  %p65_p7 = scmp.eq.s32.totalorder %s1195_s0, 0 }
  0x3d   : > { %s1616_s20 = smov (%p50_p4, %s48_s20), 0  ;;  %p1594_p11 = scmp.eq.s32.totalorder %s1288_s12, 1 }
  0x3e   : > { %1592 = sst [smem:[#allocation18_spill]] %s1616_s20  ;;  %p1346_p9 = por %p65_p7, %p64_p5 }
  0x3f   : > { %p1352_p13 = por %p1594_p11, %p64_p5  ;;  %s52_s23 = ssub.s32 %s1191_s11, %s1616_s20 }
  0x40   : > { %p927_p0 = scmp.lt.s32.totalorder %s1195_s0, 2  ;;  %p55_p1 = scmp.eq.s32.totalorder %s52_s23, 0 }
  0x41   : > { %s1360_s18 = sand.u32 1, %s1183_s9   ;;  %s832_s26 = sshll.u32 %s1191_s11, 7 }
  0x42   : > { %s792_s24 = sshll.u32 %s1360_s18, 3  ;;  %s1597_s1 = sld [smem:[#allocation20_spill]] }
  0x43   : > { %s1364_s25 = scalar_select %p55_p1, %s1183_s9, %s57_s21  }
  0x44   : > { %s253_s17 = scalar_lea.vmem [#allocation5], %s792_s24  ;;  %p1376_p2 = pnand %p927_p0, %p1346_p9 }
  0x45   : > { %1596 = sst [smem:[#allocation19_spill]] %s1364_s25  ;;  %s262_s23 = sshll.u32 %s253_s17, 4  ;;  %s1372_s23 = int_to_ptr.vmem [resolvable:$true] %s262_s23 }
  0x46   : > { %s795_s30 = sshll.u32 %s1360_s18, 6  ;;  %s250_s27 = scalar_lea.sflag [#allocation6], %s1360_s18 }
  0x47   : > { %p1045_p6 = pneg %p1376_p2 }
  0x48   : > { %s1370_s13 = scalar_lea.hbm %s1597_s1, %s832_s26  ;;  %s1048_s22 = scalar_lea.hbm %s1597_s1, 256 }
  0x49   : > { %s1043_s26 = scalar_lea.hbm %s1370_s13, 128  ;;  %p1049_p12 = scmp.lt.u32.totalorder %s1370_s13, %s1597_s1 }
  0x4a   : > { %p1044_p3 = scmp.ne.s32.totalorder %s1370_s13, %s1043_s26  ;;  %p1050_p4 = scmp.lt.u32.totalorder %s1048_s22, %s1043_s26 }
  0x4b   : > { %p1052_p7 = scmp.lt.u32.totalorder %s1043_s26, %s1370_s13 }
  0x4c   : > { %p1046_p8 = pnand %p1045_p6, %p1044_p3  ;;  %p1051_p5 = por %p1050_p4, %p1049_p12 }
  0x4e   : > { %p1047_p10 = pneg %p1046_p8  ;;  %p1053_p9 = por %p1052_p7, %p1051_p5 }
  0x50   : > { %p1054_p11 = pnand %p1053_p9, %p1047_p10 }
  0x52   : > { %1057 = shalt.err (!%p1054_p11)
}
  0x53   : > { %s1058_s21 = scalar_lea.vmem %s1372_s23, 128  ;;  %s1201_s24 = smov [#allocation5]  }
  0x54   : > { %p1059_p0 = scmp.ne.s32.totalorder %s1372_s23, %s1058_s21  ;;  %s1063_s28 = sshll.u32 %s1201_s24, 4  ;;  %s1064_s28 = int_to_ptr.vmem [resolvable:$false] %s1063_s28 }
  0x55   : > { %s1065_s4 = scalar_lea.vmem %s1064_s28, 256  ;;  %p1066_p8 = scmp.lt.s32.totalorder %s1372_s23, %s1064_s28 }
  0x56   : > { %p1061_p1 = pnand %p1059_p0, %p1045_p6  ;;  %p1067_p12 = scmp.lt.s32.totalorder %s1065_s4, %s1058_s21 }
  0x58   : > { %p1062_p3 = pneg %p1061_p1  ;;  %p1068_p4 = por %p1067_p12, %p1066_p8 }
  0x5a   : > { %p1069_p5 = pnand %p1068_p4, %p1062_p3 }
  0x5c   : > { %1072 = shalt.err (!%p1069_p5)
}
  0x5d   : > { %s1599_s26 = smov 4   ;;  %s1600_s22 = smov 64  }
  0x5e   : > { %918 = dma.hbm_to_vmem [thread:$0]  (!%p1376_p2), %s1370_s13, 128, %s1372_s23, %s250_s27, %s1600_s22, %s1600_s22, %s1599_s26  }
  0x5f   : > { %s833_s17 = sshll.u32 %s1191_s11, 10  ;;  %s276_s4 = scalar_lea.vmem [#allocation8], %s795_s30 }
  0x60   : > { %s1417_s28 = scalar_lea.hbm %s1570_s2, %s833_s17  ;;  %s283_s1 = sshll.u32 %s276_s4, 4  ;;  %s1421_s1 = int_to_ptr.vmem [resolvable:$true] %s283_s1 }
  0x61   : > { %s1601_s20 = sand.u32 1, %s1195_s0   ;;  %s1073_s9 = scalar_lea.hbm %s1417_s28, 1024 }
  0x62   : > { %s1425_s25 = scalar_lea.sflag [#allocation9], %s1601_s20  ;;  %p1074_p10 = scmp.ne.s32.totalorder %s1417_s28, %s1073_s9 }
  0x63   : > { %s1078_s18 = scalar_lea.hbm %s1570_s2, 2048  ;;  %p1079_p11 = scmp.lt.u32.totalorder %s1417_s28, %s1570_s2 }
  0x64   : > { %p1076_p7 = pnand %p1074_p10, %p1045_p6  ;;  %p1080_p0 = scmp.lt.u32.totalorder %s1078_s18, %s1073_s9 }
  0x65   : > { %p1082_p3 = scmp.lt.u32.totalorder %s1073_s9, %s1417_s28 }
  0x66   : > { %p1077_p9 = pneg %p1076_p7  ;;  %p1081_p1 = por %p1080_p0, %p1079_p11 }
  0x68   : > { %p1083_p8 = por %p1082_p3, %p1081_p1 }
  0x6a   : > { %p1084_p12 = pnand %p1083_p8, %p1077_p9 }
  0x6c   : > { %1087 = shalt.err (!%p1084_p12)
}
  0x6d   : > { %s1088_s20 = scalar_lea.vmem %s1421_s1, 1024  ;;  %s1202_s30 = smov [#allocation8]  }
  0x6e   : > { %p1089_p4 = scmp.ne.s32.totalorder %s1421_s1, %s1088_s20  ;;  %s1093_s24 = sshll.u32 %s1202_s30, 4  ;;  %s1094_s24 = int_to_ptr.vmem [resolvable:$false] %s1093_s24 }
  0x6f   : > { %s1095_s21 = scalar_lea.vmem %s1094_s24, 2048  ;;  %p1096_p7 = scmp.lt.s32.totalorder %s1421_s1, %s1094_s24 }
  0x70   : > { %p1091_p5 = pnand %p1089_p4, %p1045_p6  ;;  %p1097_p11 = scmp.lt.s32.totalorder %s1095_s21, %s1088_s20 }
  0x72   : > { %p1092_p10 = pneg %p1091_p5  ;;  %p1098_p0 = por %p1097_p11, %p1096_p7 }
  0x74   : > { %p1099_p1 = pnand %p1098_p0, %p1092_p10 }
  0x76   : > { %1102 = shalt.err (!%p1099_p1)
}
  0x77   : > { %921 = dma.hbm_to_vmem [thread:$0]  (!%p1376_p2), %s1417_s28, 1024, %s1421_s1, %s1425_s25, %s1600_s22, %s1600_s22, %s1599_s26  }
  0x78   : > { %p1602_p6 = scmp.ne.s32.totalorder %s1589_s16, 0 }
  0x79   : > { %s1457_s9 = sand.u32 (!%p1602_p6), 1, %s1179_s8   ;;  %p1603_p9 = scmp.ne.s32.totalorder (!%p1602_p6), %s1587_s14, 0 }
  0x7a   : > { %301 = sbr.rel (%p1602_p6) target bundleno = 673 (0x2a1), region = 40  ;;  %s799_s4 = sshll.u32 (!%p1602_p6), %s1457_s9, 3 }
  0x7b   : > { %s304_s13 = scalar_lea.sflag (!%p1602_p6), [#allocation6], %s1457_s9  ;;  %s1461_s23 = scalar_lea.vmem (!%p1602_p6), [#allocation5], %s799_s4 }
  0x81   : > { %1158 = dma.done.wait (%p1603_p9), %s304_s13, 128  }
  0x82   : > { %1160 = vsyncadd (%p1603_p9), %s304_s13, 4294967168  ;;  %s312_s1 = sand.u32 1, %s1288_s12   ;;  %s800_s16 = sshll.u32 %s1457_s9, 6 }
  0x83   : > { %s313_s29 = scalar_lea.sflag [#allocation9], %s312_s1  ;;  %s1469_s25 = scalar_lea.vmem [#allocation8], %s800_s16 }
  0x84   : > { %1162 = dma.done.wait (%p1603_p9), %s313_s29, 1024  }
  0x85   : > { %1164 = vsyncadd (%p1603_p9), %s313_s29, 4294966272  ;;  %p1604_p2 = scmp.eq.s32.totalorder %s1288_s12, 0 }
  0x87   : > { %1166 = dma.done.wait (%p1604_p2), [#allocation9], 1024   ;;  %p1605_p3 = pmov %p1604_p2 }
  0x88   : > { %p359_p8 = scmp.lt.s32.totalorder %s1187_s10, 1  ;;  %s1481_s26 = sld [smem:[#allocation4 + %s1187_s10]] }
  0x89   : > { %1168 = vsyncadd (%p1605_p3), [#allocation9], 4294966272  ;;  %s1491_s27 = scalar_lea.vmem [#allocation11], %s799_s4 }
  0x8a   : > { %s1484_s22 = scalar_select %p359_p8, %s1187_s10, 1 }
  0x8c   : > { %s361_s14 = scalar_lea.vmem %s1571_s3, %s1484_s22 }
  0x8e   : > { %p803_p12 = scmp.gt.s32.totalorder %s1481_s26, 0 }
  0x8f   : > { %v988_v0 = vld [vmem:[%s1469_s25] sm:$0xff] (%p803_p12)   ;;  %v1203_v1 = vmov (%p803_p12), 0.0   ;;  %v989_v2 = vld [vmem:[%s1469_s25 + $0x8] sm:$0xff] (%p803_p12)   ;;  %vm1204_vm0 = vmmov (%p803_p12), 0   ;;  %v990_v3 = vld [vmem:[%s1469_s25 + $0x10] sm:$0xff] (%p803_p12)  }
  0x90   : > { %374 = sbr.rel (!%p803_p12) target bundleno = 395 (0x18b), region = 56  ;;  %861 = vmatprep.subr.bf16.mxu0 (%p803_p12), %v1203_v1  ;;  %877 = vmatprep.mubr.msk.bf16.mxu0 (%p803_p12), %vm1204_vm0, %v1203_v1  ;;  %v991_v4 = vld [vmem:[%s1469_s25 + $0x18] sm:$0xff] (%p803_p12)   ;;  %v992_v5 = vld [vmem:[%s1469_s25 + $0x20] sm:$0xff] (%p803_p12)   ;;  %v993_v6 = vld [vmem:[%s1469_s25 + $0x28] sm:$0xff] (%p803_p12)  }
  0x91   : > { %862 = vmatpush3.bf16.msra.mxu0 (%p803_p12), %v988_v0  ;;  %v994_v7 = vld [vmem:[%s1469_s25 + $0x30] sm:$0xff] (%p803_p12)   ;;  %v995_v8 = vld [vmem:[%s1469_s25 + $0x38] sm:$0xff] (%p803_p12)   ;;  %v805_v10 = vld [vmem:[%s361_s14] ss:$0 sm:$0xff] (%p803_p12) }
  0x92   : > { %863 = vmatprep.subr.bf16.mxu0 (%p803_p12), %v1203_v1  ;;  %v996_v9 = vld [vmem:[%s1461_s23] sm:$0xff] (%p803_p12)  }
  0x95   : > { %864 = vmatpush3.bf16.msra.mxu0 (%p803_p12), %v989_v2 }
  0x96   : > { %865 = vmatprep.subr.bf16.mxu0 (%p803_p12), %v1203_v1 }
  0x99   : > { %866 = vmatpush3.bf16.msra.mxu0 %v990_v3 }
  0x9a   : > { %867 = vmatprep.subr.bf16.mxu0 %v1203_v1 }
  0x9d   : > { %868 = vmatpush3.bf16.msra.mxu0 %v991_v4 }
  0x9e   : > { %869 = vmatprep.subr.bf16.mxu0 %v1203_v1 }
  0xa1   : > { %870 = vmatpush3.bf16.msra.mxu0 %v992_v5 }
  0xa2   : > { %871 = vmatprep.subr.bf16.mxu0 %v1203_v1 }
  0xa5   : > { %872 = vmatpush3.bf16.msra.mxu0 %v993_v6 }
  0xa6   : > { %873 = vmatprep.subr.bf16.mxu0 %v1203_v1 }
  0xa9   : > { %874 = vmatpush3.bf16.msra.mxu0 %v994_v7 }
  0xaa   : > { %875 = vmatprep.subr.bf16.mxu0 %v1203_v1 }
  0xad   : > { %876 = vmatpush3.bf16.msra.mxu0 %v995_v8 }
  0xb0   : > { %878 = vmatmul.mubr.bf16.vlgmr.msra.gmra.mrb[0].mxu0 %v996_v9 }
 0x183   : > { %v488_v11 = vpop.f32.mrb[0].mxu0 }
 0x184   : > { %v879_v12 = vpop.f32.mrb[1].mxu0  ;;  %v489_v14 = vadd.f32 %v805_v10, %v488_v11 }
 0x185   : > { %v491_v13 = vpop.f32.mrb[2].mxu0 }
 0x186   : > { %v492_v15 = vadd.f32 %v805_v10, %v491_v13  ;;  %v880_v16 = vpop.f32.mrb[3].mxu0 }
 0x188   : > { %v495_v17 = vpack.c.bf16 %v492_v15, %v489_v14 }
 0x18a   : > { %496 = vst [vmem:[#allocation2] sm:$0xff] %v495_v17 }
 0x18b PF: > { %p815_p4 = scmp.le.s32.totalorder %s1481_s26, 0 }
 0x18c   : > { %v997_v18 = vld [vmem:[#allocation10] sm:$0xff] (!%p815_p4)   ;;  %v1205_v19 = vmov (!%p815_p4), 0.0   ;;  %v998_v20 = vld [vmem:[#allocation10 + $0x8] sm:$0xff] (!%p815_p4)   ;;  %vm1206_vm1 = vmmov (!%p815_p4), 0   ;;  %v999_v21 = vld [vmem:[#allocation10 + $0x10] sm:$0xff] (!%p815_p4)  }
 0x18d   : > { %499 = sbr.rel (%p815_p4) target bundleno = 648 (0x288), region = 60  ;;  %881 = vmatprep.subr.bf16.mxu0 (!%p815_p4), %v1205_v19  ;;  %897 = vmatprep.mubr.msk.bf16.mxu0 (!%p815_p4), %vm1206_vm1, %v1205_v19  ;;  %v1000_v22 = vld [vmem:[#allocation10 + $0x18] sm:$0xff] (!%p815_p4)   ;;  %v1001_v23 = vld [vmem:[#allocation10 + $0x20] sm:$0xff] (!%p815_p4)   ;;  %v1002_v24 = vld [vmem:[#allocation10 + $0x28] sm:$0xff] (!%p815_p4)  }
 0x18e   : > { %882 = vmatpush3.bf16.msra.mxu0 (!%p815_p4), %v997_v18  ;;  %v1003_v25 = vld [vmem:[#allocation10 + $0x30] sm:$0xff] (!%p815_p4)   ;;  %v1004_v26 = vld [vmem:[#allocation10 + $0x38] sm:$0xff] (!%p815_p4)   ;;  %v816_v28 = vld [vmem:[%s1573_s5] ss:$0 sm:$0xff] (!%p815_p4) }
 0x18f   : > { %883 = vmatprep.subr.bf16.mxu0 (!%p815_p4), %v1205_v19 }
 0x191   : > { %v500_v27 = vld [vmem:[#allocation2] sm:$0xff] (!%p815_p4) }
 0x192   : > { %884 = vmatpush3.bf16.msra.mxu0 (!%p815_p4), %v998_v20 }
 0x193   : > { %885 = vmatprep.subr.bf16.mxu0 (!%p815_p4), %v1205_v19 }
 0x196   : > { %886 = vmatpush3.bf16.msra.mxu0 %v999_v21 }
 0x197   : > { %887 = vmatprep.subr.bf16.mxu0 %v1205_v19 }
 0x19a   : > { %888 = vmatpush3.bf16.msra.mxu0 %v1000_v22 }
 0x19b   : > { %889 = vmatprep.subr.bf16.mxu0 %v1205_v19 }
 0x19e   : > { %890 = vmatpush3.bf16.msra.mxu0 %v1001_v23 }
 0x19f   : > { %891 = vmatprep.subr.bf16.mxu0 %v1205_v19 }
 0x1a2   : > { %892 = vmatpush3.bf16.msra.mxu0 %v1002_v24 }
 0x1a3   : > { %893 = vmatprep.subr.bf16.mxu0 %v1205_v19 }
 0x1a6   : > { %894 = vmatpush3.bf16.msra.mxu0 %v1003_v25 }
 0x1a7   : > { %895 = vmatprep.subr.bf16.mxu0 %v1205_v19 }
 0x1aa   : > { %896 = vmatpush3.bf16.msra.mxu0 %v1004_v26 }
 0x1ad   : > { %898 = vmatmul.mubr.bf16.vlgmr.msra.gmra.mrb[0].mxu0 %v500_v27 }
 0x280   : > { %v606_v29 = vpop.f32.mrb[0].mxu0 }
 0x281   : > { %v899_v30 = vpop.f32.mrb[1].mxu0  ;;  %v607_v32 = vadd.f32 %v816_v28, %v606_v29 }
 0x282   : > { %v609_v31 = vpop.f32.mrb[2].mxu0 }
 0x283   : > { %v610_v33 = vadd.f32 %v816_v28, %v609_v31  ;;  %v900_v34 = vpop.f32.mrb[3].mxu0 }
 0x285   : > { %v841_v35 = vpack.c.bf16 %v610_v33, %v607_v32 }
 0x287   : > { %842 = vst [vmem:[%s1491_s27] sm:$0xff] %v841_v35  }
 0x288 PF: > { %s837_s24 = sshll.u32 %s1187_s10, 7  ;;  %s640_s23 = sshll.u32 %s1491_s27, 4  ;;  %s1519_s23 = int_to_ptr.vmem [resolvable:$true] %s640_s23 }
 0x289   : > { %s1516_s13 = scalar_lea.hbm %s1574_s6, %s837_s24  ;;  %s624_s1 = scalar_lea.sflag [#allocation7], %s1457_s9 }
 0x28a   : > { %s1103_s16 = scalar_lea.vmem %s1519_s23, 128  ;;  %s1207_s29 = smov [#allocation11]  }
 0x28b   : > { %p1104_p5 = scmp.ne.s32.totalorder %s1519_s23, %s1103_s16  ;;  %s1107_s25 = sshll.u32 %s1207_s29, 4  ;;  %s1108_s25 = int_to_ptr.vmem [resolvable:$false] %s1107_s25 }
 0x28c   : > { %s1109_s10 = scalar_lea.vmem %s1108_s25, 256  ;;  %p1110_p11 = scmp.lt.s32.totalorder %s1519_s23, %s1108_s25 }
 0x28d   : > { %p1105_p10 = pnand %p1104_p5, %p1352_p13  ;;  %p1111_p0 = scmp.lt.s32.totalorder %s1109_s10, %s1103_s16 }
 0x28f   : > { %p1106_p7 = pneg %p1105_p10  ;;  %p1112_p1 = por %p1111_p0, %p1110_p11 }
 0x291   : > { %p1113_p6 = pnand %p1112_p1, %p1106_p7 }
 0x293   : > { %1116 = shalt.err (!%p1113_p6)
}
 0x294   : > { %s1117_s26 = scalar_lea.hbm %s1516_s13, 128  ;;  %s1121_s18 = scalar_lea.hbm %s1574_s6, 256 }
 0x295   : > { %p1118_p9 = scmp.ne.s32.totalorder %s1516_s13, %s1117_s26  ;;  %p1122_p8 = scmp.lt.u32.totalorder %s1516_s13, %s1574_s6 }
 0x296   : > { %p1123_p12 = scmp.lt.u32.totalorder %s1121_s18, %s1117_s26  ;;  %p1125_p5 = scmp.lt.u32.totalorder %s1117_s26, %s1516_s13 }
 0x297   : > { %p1119_p2 = pnand %p1118_p9, %p1352_p13 }
 0x298   : > { %p1124_p4 = por %p1123_p12, %p1122_p8 }
 0x299   : > { %p1120_p3 = pneg %p1119_p2 }
 0x29a   : > { %p1126_p10 = por %p1125_p5, %p1124_p4 }
 0x29c   : > { %p1127_p7 = pnand %p1126_p10, %p1120_p3 }
 0x29e   : > { %1130 = shalt.err (!%p1127_p7)
}
 0x29f   : > { %s1208_s12 = smov 64   ;;  %s1209_s17 = smov 4  }
 0x2a0   : > { %909 = dma.vmem_to_hbm [thread:$0]  (%p1352_p13), %s1519_s23, 128, %s1516_s13, %s624_s1, %s1208_s12, %s1208_s12, %s1209_s17  }
 0x2a1 PF: > { %s655_s20 = sand.u32 1, %s1175_s7   ;;  %p1606_p11 = scmp.ne.s32.totalorder %s1588_s15, 0 }
 0x2a2   : > { %p1607_p0 = scmp.ge.s32.totalorder %s1195_s0, 2  ;;  %s656_s30 = scalar_lea.sflag [#allocation7], %s655_s20 }
 0x2a4   : > { %p923_p1 = pnand %p1607_p0, %p1606_p11 }
 0x2a6   : > { %1170 = dma.done.wait (!%p923_p1), %s656_s30, 128  }
 0x2a7   : > { %1172 = vsyncadd (!%p923_p1), %s656_s30, 4294967168  ;;  %s29_s0 = sadd.s32 1, %s1195_s0   ;;  %s1608_s24 = sld [smem:[#allocation17_spill]] }
 0x2a8   : > { %p26_p6 = scmp.ge.s32.totalorder %s29_s0, 4   ;;  %s1609_s9 = sld [smem:[#allocation19_spill]] }
 0x2a9   : > { %s1610_s19 = sld [smem:[#allocation18_spill]]  ;;  %s1611_s7 = smov %s1179_s8 }
 0x2aa   : > { %s1613_s10 = smov %s1191_s11  ;;  %28 = sbr.rel (!%p26_p6) target bundleno = 21 (0x15), region = 117 }
 0x2ad   : > { %s1612_s8 = smov %s1608_s24 }
 0x2af   : > { %s1614_s11 = smov %s1610_s19 }
 0x2b1   :  { %661 = vsyncpa [#allocation6], 1 }
 0x2b2   :  { %663 = vsyncpa [#allocation6 + $0x1], 1 }
 0x2b3   :  { %664 = vsyncpa [#allocation9], 1 }
 0x2b4   :  { %666 = vsyncpa [#allocation9 + $0x1], 1 }
 0x2b5   :  { %667 = vsyncpa [#allocation7], 1 }
 0x2b6   :  { %669 = vsyncpa [#allocation7 + $0x1], 1 }

</bundles_post_ra>
